<compile_context>
chip_gen: v7x
topology: tpu7x:2x2x1
jax: 0.10.0
libtpu: 0.0.40
codegen_flags: <defaults>
</compile_context>

<pallas_src>
import functools

import numpy as np
import jax
import jax.numpy as jnp
from jax import lax
from jax.experimental import pallas as pl
from jax.experimental.pallas import tpu as pltpu


def _round_up(a, b):
    return ((a + b - 1) // b) * b


def _fc_kernel(x_ref, w_ref, b_ref, o_ref, *, use_relu):
    # x_ref: (TM, K)   tile of flattened input
    # w_ref: (TN, K)   tile of PyTorch-layout weight (out, in) -> contract on K
    # b_ref: (1, TN)   bias tile
    # o_ref: (TM, TN)  output tile
    y = lax.dot_general(
        x_ref[...], w_ref[...],
        dimension_numbers=(((1,), (1,)), ((), ())),
        preferred_element_type=jnp.float32,
    )
    y = y + b_ref[...]
    if use_relu:
        y = jnp.maximum(y, 0.0)
    o_ref[...] = y.astype(o_ref.dtype)


def _fc_dropout_kernel(x_ref, w_ref, b_ref, r_ref, o_ref, *,
                       use_relu, keep_threshold, inv_keep):
    # r_ref: (TM, TN) uint32 random bits; keep iff bits < keep_threshold.
    y = lax.dot_general(
        x_ref[...], w_ref[...],
        dimension_numbers=(((1,), (1,)), ((), ())),
        preferred_element_type=jnp.float32,
    )
    y = y + b_ref[...]
    if use_relu:
        y = jnp.maximum(y, 0.0)
    keep = r_ref[...] < np.uint32(keep_threshold)
    y = jnp.where(keep, y * jnp.float32(inv_keep), 0.0)
    o_ref[...] = y.astype(o_ref.dtype)


def fc_forward(x, weight, bias, *, use_relu=True, dropout_r=0.0, seed=0):
    """Pallas implementation of FC.forward.

    x:      (..., in_size)
    weight: (out_size, in_size)   -- PyTorch nn.Linear convention
    bias:   (out_size,)
    """
    in_size = x.shape[-1]
    out_size = weight.shape[0]
    lead = x.shape[:-1]
    m = 1
    for d in lead:
        m *= d
    x2 = x.reshape(m, in_size)

    # --- Pad N up to a multiple of 128 for lane-dense output stores. ---
    n_pad = _round_up(out_size, 128)
    w = weight
    b = bias
    if n_pad != out_size:
        w = jnp.pad(weight, ((0, n_pad - out_size), (0, 0)))
        b = jnp.pad(bias, (0, n_pad - out_size))
    b2 = b.reshape(1, n_pad)

    # --- Tile sizes. ---
    tm = min(256, _round_up(m, 8))
    tn = n_pad
    for cand in (512, 256, 128):
        if n_pad % cand == 0:
            tn = cand
            break

    # Keep double-buffered tile footprint well under the scoped-VMEM defaults
    # (16 MiB v5e, 32 MiB v6e/v7x).
    def _tile_bytes(tm_, tn_):
        per = tm_ * in_size + tn_ * in_size + tn_ + 2 * tm_ * tn_
        return 2 * per * 4
    while tm > 8 and _tile_bytes(tm, tn) > 14 * 1024 * 1024:
        tm //= 2

    m_pad = _round_up(m, tm)
    if m_pad != m:
        x2 = jnp.pad(x2, ((0, m_pad - m), (0, 0)))

    gm = m_pad // tm
    gn = n_pad // tn
    grid = (gn, gm)  # N outer: weight tile stays resident across the inner M sweep.

    x_spec = pl.BlockSpec((tm, in_size), lambda j, i: (i, 0))
    w_spec = pl.BlockSpec((tn, in_size), lambda j, i: (j, 0))
    b_spec = pl.BlockSpec((1, tn), lambda j, i: (0, j))
    o_spec = pl.BlockSpec((tm, tn), lambda j, i: (i, j))

    cost = pl.CostEstimate(
        flops=2 * m_pad * in_size * n_pad,
        transcendentals=0,
        bytes_accessed=4 * (m_pad * in_size + n_pad * in_size + n_pad + m_pad * n_pad),
    )
    cparams = pltpu.CompilerParams(
        dimension_semantics=("parallel", "parallel"),
    )
    out_shape = jax.ShapeDtypeStruct((m_pad, n_pad), x.dtype)

    if dropout_r > 0.0:
        # TODO(synk): in-kernel pltpu.prng_* hardware RNG has no interpret/CPU
        # lowering; dropout bits are generated with jax.random and streamed in.
        bits = jax.random.bits(jax.random.PRNGKey(seed), (m_pad, n_pad),
                               dtype=jnp.uint32)
        keep_threshold = min(int((1.0 - dropout_r) * (2 ** 32)), 2 ** 32 - 1)
        kernel = functools.partial(
            _fc_dropout_kernel, use_relu=use_relu,
            keep_threshold=keep_threshold, inv_keep=1.0 / (1.0 - dropout_r))
        r_spec = pl.BlockSpec((tm, tn), lambda j, i: (i, j))
        out = pl.pallas_call(
            kernel,
            out_shape=out_shape,
            grid=grid,
            in_specs=[x_spec, w_spec, b_spec, r_spec],
            out_specs=o_spec,
            compiler_params=cparams,
            cost_estimate=cost,
        )(x2, w, b2, bits)
    else:
        kernel = functools.partial(_fc_kernel, use_relu=use_relu)
        out = pl.pallas_call(
            kernel,
            out_shape=out_shape,
            grid=grid,
            in_specs=[x_spec, w_spec, b_spec],
            out_specs=o_spec,
            compiler_params=cparams,
            cost_estimate=cost,
        )(x2, w, b2)

    out = out[:m, :out_size]
    return out.reshape(*lead, out_size)


def _init_params(key, in_size, out_size):
    # Deterministic synthetic init mimicking nn.Linear's uniform(-1/sqrt(in), 1/sqrt(in)).
    k1, k2 = jax.random.split(key)
    bound = 1.0 / (in_size ** 0.5)
    weight = jax.random.uniform(k1, (out_size, in_size), jnp.float32, -bound, bound)
    bias = jax.random.uniform(k2, (out_size,), jnp.float32, -bound, bound)
    return weight, bias


if __name__ == "__main__":
    key = jax.random.PRNGKey(0)
    kx, kp = jax.random.split(key)

    batch, seq, in_size, out_size = 2, 8, 32, 64
    x = jax.random.normal(kx, (batch, seq, in_size), dtype=jnp.float32)
    weight, bias = _init_params(kp, in_size, out_size)

    # Deterministic path (dropout_r=0.0, use_relu=True) vs pure-JAX reference.
    out = fc_forward(x, weight, bias, use_relu=True, dropout_r=0.0)
    out = jax.block_until_ready(out)
    ref = jnp.maximum(jnp.einsum("bsi,oi->bso", x, weight) + bias, 0.0)
    assert out.shape == (batch, seq, out_size)
    assert jnp.allclose(out, ref, atol=1e-5, rtol=1e-5), "mismatch vs reference"

    # Dropout path: every element must be exactly 0 (dropped) or ref/(1-p) (kept).
    p = 0.1
    out_do = fc_forward(x, weight, bias, use_relu=True, dropout_r=p, seed=123)
    out_do = jax.block_until_ready(out_do)
    assert out_do.shape == (batch, seq, out_size)
    scaled = ref / (1.0 - p)
    ok = jnp.logical_or(
        jnp.abs(out_do) <= 1e-6,
        jnp.abs(out_do - scaled) <= 1e-4 + 1e-4 * jnp.abs(scaled),
    )
    assert bool(jnp.all(ok)), "dropout output is neither 0 nor scaled value"

    print("KERNEL_OK")
</pallas_src>

<mosaic_0001>
module attributes {stable_mosaic.version = 11 : i64} {
  func.func @_fc_kernel(%arg0: i32, %arg1: i32, %arg2: memref<16x32xf32, #tpu.memory_space<vmem>>, %arg3: memref<128x32xf32, #tpu.memory_space<vmem>>, %arg4: memref<1x128xf32, #tpu.memory_space<vmem>>, %arg5: memref<16x128xf32, #tpu.memory_space<vmem>>) attributes {dimension_semantics = [#tpu.dimension_semantics<parallel>, #tpu.dimension_semantics<parallel>], iteration_bounds = array<i64: 1, 1>, scalar_prefetch = 0 : i64, scratch_operands = 0 : i64, tpu.core_type = #tpu.core_type<tc>, window_params = [{transform_indices = @transform_0, window_bounds = array<i64: 16, 32>}, {transform_indices = @transform_1, window_bounds = array<i64: 128, 32>}, {transform_indices = @transform_2, window_bounds = array<i64: 1, 128>}, {transform_indices = @transform_3, window_bounds = array<i64: 16, 128>}]} {
    %c0 = arith.constant 0 : index
    %c0_0 = arith.constant 0 : index
    %0 = vector.load %arg2[%c0, %c0_0] : memref<16x32xf32, #tpu.memory_space<vmem>>, vector<16x32xf32>
    %c0_1 = arith.constant 0 : index
    %c0_2 = arith.constant 0 : index
    %1 = vector.load %arg3[%c0_1, %c0_2] : memref<128x32xf32, #tpu.memory_space<vmem>>, vector<128x32xf32>
    %cst = arith.constant dense<0.000000e+00> : vector<16x128xf32>
    %2 = tpu.matmul %0, %1, %cst {dimension_numbers = #tpu.dot_dimension_numbers<[1], [1], [0], [0], [0, 0, 1, 0], [], []>} : vector<16x32xf32>, vector<128x32xf32>, vector<16x128xf32> -> vector<16x128xf32>
    %c0_3 = arith.constant 0 : index
    %c0_4 = arith.constant 0 : index
    %3 = vector.load %arg4[%c0_3, %c0_4] : memref<1x128xf32, #tpu.memory_space<vmem>>, vector<1x128xf32>
    %4 = vector.broadcast %3 : vector<1x128xf32> to vector<16x128xf32>
    %5 = arith.addf %2, %4 : vector<16x128xf32>
    %cst_5 = arith.constant 0.000000e+00 : f32
    %6 = vector.broadcast %cst_5 : f32 to vector<16x128xf32>
    %7 = arith.maximumf %5, %6 : vector<16x128xf32>
    %c0_6 = arith.constant 0 : index
    %c0_7 = arith.constant 0 : index
    %8 = vector.load %arg5[%c0_6, %c0_7] : memref<16x128xf32, #tpu.memory_space<vmem>>, vector<16x128xf32>
    tpu.vector_store %arg5[%c0_6, %c0_7], %7 {strides = array<i32>} : memref<16x128xf32, #tpu.memory_space<vmem>>, vector<16x128xf32>,
    return
  }
  func.func @transform_0(%arg0: i32, %arg1: i32) -> (i32, i32) {
    %c0_i32 = arith.constant 0 : i32
    %c0_i32_0 = arith.constant 0 : i32
    return %arg1, %c0_i32 : i32, i32
  }
  func.func @transform_1(%arg0: i32, %arg1: i32) -> (i32, i32) {
    %c0_i32 = arith.constant 0 : i32
    %c0_i32_0 = arith.constant 0 : i32
    return %arg0, %c0_i32 : i32, i32
  }
  func.func @transform_2(%arg0: i32, %arg1: i32) -> (i32, i32) {
    %c0_i32 = arith.constant 0 : i32
    %c0_i32_0 = arith.constant 0 : i32
    return %c0_i32, %arg0 : i32, i32
  }
  func.func @transform_3(%arg0: i32, %arg1: i32) -> (i32, i32) {
    %c0_i32 = arith.constant 0 : i32
    return %arg1, %arg0 : i32, i32
  }
}

</mosaic_0001>

<bundles_post_ra>
// kernel: tpu_custom_call.1
= control target key start
LH: loop header
LB: loop body
LE: loop exit
PB: predicated region body
PF: predicated region fallthrough
CT: control target
= control target key end

     0   :  { %vm40_vm0 = vcmask 261120   ;;  %s469_s0 = inlined_call_operand.vmem [shape: f32[16,32], index: 0, kind: input, shape index: {}]   ;;  %s470_s1 = inlined_call_operand.vmem [shape: f32[128,32], index: 1, kind: input, shape index: {}]   ;;  %s471_s2 = inlined_call_operand.vmem [shape: f32[1,128], index: 2, kind: input, shape index: {}]   ;;  %s472_s3 = inlined_call_operand.hbm [shape: f32[16,128], index: 3, kind: output, shape index: {}]  }
   0x1   :  { %v17_v0 = vld [vmem:[%s470_s1] sm:$0xff]  ;;  %v18_v1 = vld [vmem:[%s470_s1 + $0x8] sm:$0xff]  ;;  %v19_v2 = vld [vmem:[%s470_s1 + $0x10] sm:$0xff] }
   0x2   :  { %v262_v3 = vpack.c.bf16 %v18_v1, %v17_v0  ;;  %vm371_vm1 = vmpackc.low %vm40_vm0, %vm40_vm0  ;;  %v20_v5 = vld [vmem:[%s470_s1 + $0x18] sm:$0xff]  ;;  %v15_v7 = vld [vmem:[%s469_s0] sm:$0xff] }
   0x3   :  { %v268_v6 = vpack.c.bf16 %v20_v5, %v19_v2  ;;  %v21_v8 = vld [vmem:[%s470_s1 + $0x20] sm:$0xff]  ;;  %v22_v9 = vld [vmem:[%s470_s1 + $0x28] sm:$0xff]  ;;  %259 = vmatprep.mubr.msk.f32.mxu0 %vm40_vm0, %v15_v7 }
   0x4   :  { %264 = vmatprep.subr.msk.bf16.mxu0 %vm371_vm1, %v262_v3 }
   0x5   :  { %267 = vmatpush3.bf16.xpose.msk.msra.mxu0 %vm371_vm1, %v262_v3 }
   0x6   :  { %270 = vmatprep.subr.msk.bf16.mxu0 %vm371_vm1, %v268_v6 }
   0x7   :  { %8 = vsyncpa [#allocation3], 0  ;;  %v274_v10 = vpack.c.bf16 %v22_v9, %v21_v8  ;;  %v23_v11 = vld [vmem:[%s470_s1 + $0x30] sm:$0xff]  ;;  %v24_v12 = vld [vmem:[%s470_s1 + $0x38] sm:$0xff] }
   0x8   :  { %v280_v13 = vpack.c.bf16 %v24_v12, %v23_v11  ;;  %v25_v14 = vld [vmem:[%s470_s1 + $0x40] sm:$0xff]  ;;  %v26_v15 = vld [vmem:[%s470_s1 + $0x48] sm:$0xff]  ;;  %v27_v17 = vld [vmem:[%s470_s1 + $0x50] sm:$0xff] }
   0x9   :  { %v286_v16 = vpack.c.bf16 %v26_v15, %v25_v14  ;;  %v28_v18 = vld [vmem:[%s470_s1 + $0x58] sm:$0xff]  ;;  %v29_v20 = vld [vmem:[%s470_s1 + $0x60] sm:$0xff]  ;;  %v30_v21 = vld [vmem:[%s470_s1 + $0x68] sm:$0xff] }
   0xa   :  { %v292_v19 = vpack.c.bf16 %v28_v18, %v27_v17  ;;  %v298_v22 = vpack.c.bf16 %v30_v21, %v29_v20  ;;  %v31_v23 = vld [vmem:[%s470_s1 + $0x70] sm:$0xff]  ;;  %v32_v24 = vld [vmem:[%s470_s1 + $0x78] sm:$0xff]  ;;  %v16_v26 = vld [vmem:[%s469_s0 + $0x8] sm:$0xff]  ;;  %s337_s1 = smov [#allocation2]  }
   0xb   :  { %v304_v25 = vpack.c.bf16 %v32_v24, %v31_v23  ;;  %v190_v27 = vld [vmem:[%s471_s2] ss:$0 sm:$0xff]  ;;  %s179_s23 = sshll.u32 %s337_s1, 4  ;;  %s180_s23 = int_to_ptr.vmem [resolvable:$true] %s179_s23 }
   0xc   :  { %s313_s24 = scalar_lea.vmem %s180_s23, 256  ;;  %p318_p1 = scmp.lt.s32.totalorder %s180_s23, %s180_s23 }
   0xd   :  { %273 = vmatpush3.bf16.xpose.msk.msra.mxu0 %vm371_vm1, %v268_v6  ;;  %p314_p0 = scmp.ne.s32.totalorder %s180_s23, %s313_s24  ;;  %p319_p2 = scmp.lt.s32.totalorder %s313_s24, %s313_s24 }
   0xe   :  { %276 = vmatprep.subr.msk.bf16.mxu0 %vm371_vm1, %v274_v10 }
   0xf   :  { %p320_p3 = por %p319_p2, %p318_p1 }
  0x11   :  { %p321_p4 = pnand %p320_p3, %p314_p0 }
  0x15   :  { %279 = vmatpush3.bf16.xpose.msk.msra.mxu0 %vm371_vm1, %v274_v10 }
  0x16   :  { %282 = vmatprep.subr.msk.bf16.mxu0 %vm371_vm1, %v280_v13 }
  0x1d   :  { %285 = vmatpush3.bf16.xpose.msk.msra.mxu0 %vm371_vm1, %v280_v13 }
  0x1e   :  { %288 = vmatprep.subr.msk.bf16.mxu0 %vm371_vm1, %v286_v16 }
  0x25   :  { %291 = vmatpush3.bf16.xpose.msk.msra.mxu0 %vm371_vm1, %v286_v16 }
  0x26   :  { %294 = vmatprep.subr.msk.bf16.mxu0 %vm371_vm1, %v292_v19 }
  0x2d   :  { %297 = vmatpush3.bf16.xpose.msk.msra.mxu0 %vm371_vm1, %v292_v19 }
  0x2e   :  { %300 = vmatprep.subr.msk.bf16.mxu0 %vm371_vm1, %v298_v22 }
  0x35   :  { %303 = vmatpush3.bf16.xpose.msk.msra.mxu0 %vm371_vm1, %v298_v22 }
  0x36   :  { %306 = vmatprep.subr.msk.bf16.mxu0 %vm371_vm1, %v304_v25 }
  0x3d   :  { %309 = vmatpush3.bf16.xpose.msk.msra.mxu0 %vm371_vm1, %v304_v25 }
  0x44   :  { %260 = vmatmul.mubr.msk.f32.vlgmr.msra.gmra.mrb[0].mxu0 %vm40_vm0, %v16_v26 }
 0x117   :  { %v261_v28 = vpop.f32.mrb[0].mxu0 }
 0x118   :  { %v167_v29 = vadd.f32 %v261_v28, %v190_v27  ;;  %v161_v30 = vpop.f32.mrb[1].mxu0 }
 0x119   :  { %v162_v31 = vadd.f32 %v190_v27, %v161_v30 }
 0x11a   :  { %v171_v32 = vmax.f32 %v167_v29, 0.0 }
 0x11b   :  { %v170_v33 = vmax.f32 %v162_v31, 0.0 }
 0x11c   :  { %173 = vst [vmem:[#allocation2 + $0x8] sm:$0xff] %v171_v32 }
 0x11d   :  { %172 = vst [vmem:[#allocation2] sm:$0xff] %v170_v33 }
 0x11e   :  { %324 = shalt.err (!%p321_p4)
}
 0x11f   :  { %s325_s25 = scalar_lea.hbm %s472_s3, 256 }
 0x120   :  { %p326_p5 = scmp.ne.s32.totalorder %s472_s3, %s325_s25  ;;  %p329_p6 = scmp.lt.u32.totalorder %s325_s25, %s472_s3 }
 0x122   :  { %p331_p7 = pnand %p329_p6, %p326_p5 }
 0x124   :  { %334 = shalt.err (!%p331_p7)
}
 0x125   :  { %s338_s30 = smov 128   ;;  %s339_s4 = smov 8  }
 0x126   :  { %185 = dma.vmem_to_hbm [thread:$0]  %s180_s23, 256, %s472_s3, [#allocation3], %s338_s30, %s338_s30, %s339_s4  }
 0x127   :  { %335 = dma.done.wait [#allocation3], 256  }
 0x128   :  { %336 = vsyncadd [#allocation3], 4294967040 }
 0x129   :  { %189 = vsyncpa [#allocation3], 1 }

</bundles_post_ra>
